<compile_context>
chip_gen: v5e
topology: v5e:2x2
jax: 0.10.0
libtpu: 0.0.40
codegen_flags: <defaults>
</compile_context>

<pallas_src>
import functools
import math

import jax
import jax.numpy as jnp
from jax import lax
from jax.experimental import pallas as pl
from jax.experimental.pallas import tpu as pltpu


def _layer_norm(x, w, b, eps=1e-5):
    mu = jnp.mean(x, axis=-1, keepdims=True)
    var = jnp.mean((x - mu) ** 2, axis=-1, keepdims=True)
    return (x - mu) * lax.rsqrt(var + eps) * w + b


def _transformer_kernel(
    x_ref,
    ln1_w, ln1_b, w_qkv, b_qkv, wo, bo,
    ln2_w, ln2_b, wfc, bfc, wproj, bproj,
    out_ref,
    *, n_head, l_valid,
):
    """One grid step = one ResidualAttentionBlock applied to one batch element."""
    layer = pl.program_id(1)

    # Layer 0: pull the input activation into the VMEM-resident output block.
    @pl.when(layer == 0)
    def _():
        out_ref[...] = x_ref[...]

    x = out_ref[0]                                   # (L, D) float32, resident
    L, D = x.shape
    dh = D // n_head

    # ---------- attention branch: x + out_proj(MHA(ln_1(x))) ----------
    h = _layer_norm(x, ln1_w[0], ln1_b[0])
    qkv = jnp.dot(h.astype(jnp.bfloat16), w_qkv[0],
                  preferred_element_type=jnp.float32) + b_qkv[0]
    q = qkv[:, :D]                 # 1/sqrt(dh) already folded into w_qkv / b_qkv
    k = qkv[:, D:2 * D]
    v = qkv[:, 2 * D:]

    if l_valid < L:                # static: only emitted when wrapper padded L
        kbias = jnp.where(
            lax.broadcasted_iota(jnp.int32, (1, L), 1) < l_valid, 0.0, -1e30)

    ctx_parts = []
    for hd in range(n_head):       # static unroll; all values stay in registers
        sl = slice(hd * dh, (hd + 1) * dh)
        qh = q[:, sl].astype(jnp.bfloat16)
        kh = k[:, sl].astype(jnp.bfloat16)
        vh = v[:, sl].astype(jnp.bfloat16)
        # scores = qh @ kh.T  (contract last dims; no explicit transpose)
        s = lax.dot_general(qh, kh, (((1,), (1,)), ((), ())),
                            preferred_element_type=jnp.float32)
        if l_valid < L:
            s = s + kbias
        s = s - jnp.max(s, axis=-1, keepdims=True)
        p = jnp.exp(s)
        p = p * pl.reciprocal(jnp.sum(p, axis=-1, keepdims=True), approx=True)
        ctx_parts.append(jnp.dot(p.astype(jnp.bfloat16), vh,
                                 preferred_element_type=jnp.float32))
    ctx = ctx_parts[0] if n_head == 1 else jnp.concatenate(ctx_parts, axis=-1)

    attn = jnp.dot(ctx.astype(jnp.bfloat16), wo[0],
                   preferred_element_type=jnp.float32) + bo[0]
    x = x + attn

    # ---------- MLP branch: x + c_proj(QuickGELU(c_fc(ln_2(x)))) ----------
    h2 = _layer_norm(x, ln2_w[0], ln2_b[0])
    z = jnp.dot(h2.astype(jnp.bfloat16), wfc[0],
                preferred_element_type=jnp.float32) + bfc[0]
    z = z * jax.nn.sigmoid(1.702 * z)                # QuickGELU in f32
    m = jnp.dot(z.astype(jnp.bfloat16), wproj[0],
                preferred_element_type=jnp.float32) + bproj[0]

    out_ref[0] = x + m


_WEIGHT_ORDER = ("ln1_w", "ln1_b", "w_qkv", "b_qkv", "wo", "bo",
                 "ln2_w", "ln2_b", "wfc", "bfc", "wproj", "bproj")


def _vmem_limit_bytes(L, D):
    dff = 4 * D
    w = 2 * (3 * D * D + D * D + D * dff + dff * D)   # bf16 weights per layer
    b = 4 * (3 * D + D + dff + D + 4 * D)             # f32 biases + LN params
    act = 4 * L * D * 2                               # x block + out block
    need = 2 * (w + b + act)                          # double-buffered pipeline
    # generous headroom, but never above the v7x 64 MiB physical ceiling
    return int(min(max(2 * need, 32 * 1024 * 1024), 48 * 1024 * 1024))


def prepare_params(params, n_head):
    """Fuse QKV, fold the 1/sqrt(dh) scale, cast weights to bf16, stack layers."""
    D = params[0]["wq"].shape[0]
    dh = D // n_head
    scale = 1.0 / math.sqrt(dh)

    def stack(fn):
        return jnp.stack([fn(p) for p in params], axis=0)

    return dict(
        ln1_w=stack(lambda p: p["ln1_w"].astype(jnp.float32)),
        ln1_b=stack(lambda p: p["ln1_b"].astype(jnp.float32)),
        w_qkv=stack(lambda p: jnp.concatenate(
            [p["wq"] * scale, p["wk"], p["wv"]], axis=1).astype(jnp.bfloat16)),
        b_qkv=stack(lambda p: jnp.concatenate(
            [p["bq"] * scale, p["bk"], p["bv"]], axis=1).astype(jnp.float32)),
        wo=stack(lambda p: p["wo"].astype(jnp.bfloat16)),
        bo=stack(lambda p: p["bo"].astype(jnp.float32)),
        ln2_w=stack(lambda p: p["ln2_w"].astype(jnp.float32)),
        ln2_b=stack(lambda p: p["ln2_b"].astype(jnp.float32)),
        wfc=stack(lambda p: p["wfc"].astype(jnp.bfloat16)),
        bfc=stack(lambda p: p["bfc"].astype(jnp.float32)),
        wproj=stack(lambda p: p["wproj"].astype(jnp.bfloat16)),
        bproj=stack(lambda p: p["bproj"].astype(jnp.float32)),
    )


def _run_transformer(x_nld, stacked, n_head, l_valid):
    N, L, D = x_nld.shape
    n_layers = stacked["w_qkv"].shape[0]
    weights = [stacked[name] for name in _WEIGHT_ORDER]

    def weight_spec(a):
        blk = (1,) + a.shape[1:]
        return pl.BlockSpec(blk, lambda n, l, _nd=a.ndim: (l,) + (0,) * (_nd - 1))

    kernel = functools.partial(_transformer_kernel, n_head=n_head, l_valid=l_valid)

    return pl.pallas_call(
        kernel,
        out_shape=jax.ShapeDtypeStruct((N, L, D), jnp.float32),
        grid_spec=pltpu.PrefetchScalarGridSpec(
            num_scalar_prefetch=0,
            grid=(N, n_layers),
            in_specs=[pl.BlockSpec((1, L, D), lambda n, l: (n, 0, 0))]
                     + [weight_spec(w) for w in weights],
            out_specs=pl.BlockSpec((1, L, D), lambda n, l: (n, 0, 0)),
        ),
        compiler_params=pltpu.CompilerParams(
            dimension_semantics=("parallel", "arbitrary"),
            vmem_limit_bytes=_vmem_limit_bytes(L, D),
        ),
    )(x_nld, *weights)


def transformer_forward(x_lnd, params, n_head):
    """x_lnd: (L, N, D) like the torch module. Returns (L, N, D) float32."""
    L, N, D = x_lnd.shape
    x = jnp.transpose(x_lnd, (1, 0, 2)).astype(jnp.float32)     # -> (N, L, D)
    l_pad = ((L + 7) // 8) * 8                                  # sublane-align seq
    if l_pad != L:
        x = jnp.pad(x, ((0, 0), (0, l_pad - L), (0, 0)))
    stacked = prepare_params(params, n_head)
    out = _run_transformer(x, stacked, n_head, l_valid=L)
    if l_pad != L:
        out = out[:, :L, :]
    return jnp.transpose(out, (1, 0, 2))                        # -> (L, N, D)


# ---------------- deterministic parameter init (synthetic) ----------------
def init_block_params(key, D):
    dff = 4 * D
    ks = jax.random.split(key, 10)

    def w(k, shape, s=0.02):
        return (s * jax.random.normal(k, shape)).astype(jnp.float32)

    # Weights are stored already in "x @ W" orientation
    # (transposed relative to torch Linear's (out, in) layout).
    return dict(
        ln1_w=jnp.ones((1, D), jnp.float32), ln1_b=jnp.zeros((1, D), jnp.float32),
        wq=w(ks[0], (D, D)), wk=w(ks[1], (D, D)), wv=w(ks[2], (D, D)),
        bq=w(ks[3], (1, D)), bk=w(ks[4], (1, D)), bv=w(ks[5], (1, D)),
        wo=w(ks[6], (D, D)), bo=jnp.zeros((1, D), jnp.float32),
        ln2_w=jnp.ones((1, D), jnp.float32), ln2_b=jnp.zeros((1, D), jnp.float32),
        wfc=w(ks[7], (D, dff)), bfc=jnp.zeros((1, dff), jnp.float32),
        wproj=w(ks[8], (dff, D)), bproj=w(ks[9], (1, D)),
    )


# ---------------- pure-JAX f32 reference (for correctness check) ----------------
def _ref_block(x, p, n_head):                      # x: (N, L, D)
    N, L, D = x.shape
    dh = D // n_head

    def ln(t, w, b):
        mu = jnp.mean(t, axis=-1, keepdims=True)
        var = jnp.mean((t - mu) ** 2, axis=-1, keepdims=True)
        return (t - mu) * lax.rsqrt(var + 1e-5) * w + b

    h = ln(x, p["ln1_w"], p["ln1_b"])
    q = (h @ p["wq"] + p["bq"]).reshape(N, L, n_head, dh).transpose(0, 2, 1, 3)
    k = (h @ p["wk"] + p["bk"]).reshape(N, L, n_head, dh).transpose(0, 2, 1, 3)
    v = (h @ p["wv"] + p["bv"]).reshape(N, L, n_head, dh).transpose(0, 2, 1, 3)
    s = jnp.einsum("nhld,nhmd->nhlm", q, k) / math.sqrt(dh)
    a = jax.nn.softmax(s, axis=-1)
    o = jnp.einsum("nhlm,nhmd->nhld", a, v).transpose(0, 2, 1, 3).reshape(N, L, D)
    x = x + o @ p["wo"] + p["bo"]
    h2 = ln(x, p["ln2_w"], p["ln2_b"])
    z = h2 @ p["wfc"] + p["bfc"]
    z = z * jax.nn.sigmoid(1.702 * z)
    return x + z @ p["wproj"] + p["bproj"]


if __name__ == "__main__":
    L, N, D, HEADS, LAYERS = 8, 2, 32, 4, 2        # seq, batch, width, heads, layers

    key = jax.random.PRNGKey(0)
    kx, kp = jax.random.split(key)
    x_lnd = jax.random.normal(kx, (L, N, D), jnp.float32)
    params = [init_block_params(k, D) for k in jax.random.split(kp, LAYERS)]

    out = transformer_forward(x_lnd, params, HEADS)
    out = jax.block_until_ready(out)

    # sanity check against a plain-JAX f32 reference of the same math
    # (kernel uses bf16 MXU operands + approx reciprocal -> relaxed tolerance)
    ref = jnp.transpose(x_lnd, (1, 0, 2))
    for p in params:
        ref = _ref_block(ref, p, HEADS)
    ref = jnp.transpose(ref, (1, 0, 2))
    assert out.shape == x_lnd.shape and out.dtype == jnp.float32
    max_err = jnp.max(jnp.abs(out - ref))
    assert jnp.allclose(out, ref, atol=1e-2, rtol=1e-2), f"mismatch: {max_err}"

    print("KERNEL_OK")
</pallas_src>

<mosaic_0001>
module attributes {stable_mosaic.version = 11 : i64} {
  func.func @_transformer_kernel(%arg0: i32, %arg1: i32, %arg2: memref<1x8x32xf32, #tpu.memory_space<vmem>>, %arg3: memref<1x1x32xf32, #tpu.memory_space<vmem>>, %arg4: memref<1x1x32xf32, #tpu.memory_space<vmem>>, %arg5: memref<1x32x96xbf16, #tpu.memory_space<vmem>>, %arg6: memref<1x1x96xf32, #tpu.memory_space<vmem>>, %arg7: memref<1x32x32xbf16, #tpu.memory_space<vmem>>, %arg8: memref<1x1x32xf32, #tpu.memory_space<vmem>>, %arg9: memref<1x1x32xf32, #tpu.memory_space<vmem>>, %arg10: memref<1x1x32xf32, #tpu.memory_space<vmem>>, %arg11: memref<1x32x128xbf16, #tpu.memory_space<vmem>>, %arg12: memref<1x1x128xf32, #tpu.memory_space<vmem>>, %arg13: memref<1x128x32xbf16, #tpu.memory_space<vmem>>, %arg14: memref<1x1x32xf32, #tpu.memory_space<vmem>>, %arg15: memref<1x8x32xf32, #tpu.memory_space<vmem>>) attributes {dimension_semantics = [#tpu.dimension_semantics<parallel>, #tpu.dimension_semantics<arbitrary>], iteration_bounds = array<i64: 2, 2>, scalar_prefetch = 0 : i64, scratch_operands = 0 : i64, tpu.core_type = #tpu.core_type<tc>, window_params = [{transform_indices = @transform_0, window_bounds = array<i64: 1, 8, 32>}, {transform_indices = @transform_1, window_bounds = array<i64: 1, 1, 32>}, {transform_indices = @transform_2, window_bounds = array<i64: 1, 1, 32>}, {transform_indices = @transform_3, window_bounds = array<i64: 1, 32, 96>}, {transform_indices = @transform_4, window_bounds = array<i64: 1, 1, 96>}, {transform_indices = @transform_5, window_bounds = array<i64: 1, 32, 32>}, {transform_indices = @transform_6, window_bounds = array<i64: 1, 1, 32>}, {transform_indices = @transform_7, window_bounds = array<i64: 1, 1, 32>}, {transform_indices = @transform_8, window_bounds = array<i64: 1, 1, 32>}, {transform_indices = @transform_9, window_bounds = array<i64: 1, 32, 128>}, {transform_indices = @transform_10, window_bounds = array<i64: 1, 1, 128>}, {transform_indices = @transform_11, window_bounds = array<i64: 1, 128, 32>}, {transform_indices = @transform_12, window_bounds = array<i64: 1, 1, 32>}, {transform_indices = @transform_13, window_bounds = array<i64: 1, 8, 32>}]} {
    %c0_i32 = arith.constant 0 : i32
    %0 = arith.cmpi eq, %arg1, %c0_i32 : i32
    %1 = arith.extui %0 : i1 to i32
    %c0_i32_0 = arith.constant 0 : i32
    %2 = arith.cmpi ne, %1, %c0_i32_0 : i32
    scf.if %2 {
      %c0_73 = arith.constant 0 : index
      %c0_74 = arith.constant 0 : index
      %c0_75 = arith.constant 0 : index
      %182 = vector.load %arg2[%c0_73, %c0_74, %c0_75] : memref<1x8x32xf32, #tpu.memory_space<vmem>>, vector<1x8x32xf32>
      %c0_76 = arith.constant 0 : index
      %c0_77 = arith.constant 0 : index
      %c0_78 = arith.constant 0 : index
      %183 = vector.load %arg15[%c0_76, %c0_77, %c0_78] : memref<1x8x32xf32, #tpu.memory_space<vmem>>, vector<1x8x32xf32>
      tpu.vector_store %arg15[%c0_76, %c0_77, %c0_78], %182 {strides = array<i32>} : memref<1x8x32xf32, #tpu.memory_space<vmem>>, vector<1x8x32xf32>,
    } else {
    }
    %c0 = arith.constant 0 : index
    %c0_1 = arith.constant 0 : index
    %c0_2 = arith.constant 0 : index
    %3 = vector.load %arg15[%c0, %c0_1, %c0_2] : memref<1x8x32xf32, #tpu.memory_space<vmem>>, vector<1x8x32xf32>
    %4 = vector.shape_cast %3 : vector<1x8x32xf32> to vector<8x32xf32>
    %c0_3 = arith.constant 0 : index
    %c0_4 = arith.constant 0 : index
    %c0_5 = arith.constant 0 : index
    %5 = vector.load %arg3[%c0_3, %c0_4, %c0_5] : memref<1x1x32xf32, #tpu.memory_space<vmem>>, vector<1x1x32xf32>
    %6 = vector.shape_cast %5 : vector<1x1x32xf32> to vector<1x32xf32>
    %c0_6 = arith.constant 0 : index
    %c0_7 = arith.constant 0 : index
    %c0_8 = arith.constant 0 : index
    %7 = vector.load %arg4[%c0_6, %c0_7, %c0_8] : memref<1x1x32xf32, #tpu.memory_space<vmem>>, vector<1x1x32xf32>
    %8 = vector.shape_cast %7 : vector<1x1x32xf32> to vector<1x32xf32>
    %cst = arith.constant dense<0.000000e+00> : vector<8xf32>
    %9 = vector.multi_reduction <add>, %4, %cst [1] : vector<8x32xf32> to vector<8xf32>
    %10 = vector.shape_cast %9 : vector<8xf32> to vector<8x1xf32>
    %cst_9 = arith.constant 3.200000e+01 : f32
    %11 = vector.broadcast %cst_9 : f32 to vector<8x1xf32>
    %12 = arith.divf %10, %11 : vector<8x1xf32>
    %13 = vector.broadcast %12 : vector<8x1xf32> to vector<8x32xf32>
    %14 = arith.subf %4, %13 : vector<8x32xf32>
    %15 = arith.mulf %14, %14 : vector<8x32xf32>
    %cst_10 = arith.constant dense<0.000000e+00> : vector<8xf32>
    %16 = vector.multi_reduction <add>, %15, %cst_10 [1] : vector<8x32xf32> to vector<8xf32>
    %17 = vector.shape_cast %16 : vector<8xf32> to vector<8x1xf32>
    %cst_11 = arith.constant 3.200000e+01 : f32
    %18 = vector.broadcast %cst_11 : f32 to vector<8x1xf32>
    %19 = arith.divf %17, %18 : vector<8x1xf32>
    %20 = vector.broadcast %12 : vector<8x1xf32> to vector<8x32xf32>
    %21 = arith.subf %4, %20 : vector<8x32xf32>
    %cst_12 = arith.constant 9.99999974E-6 : f32
    %22 = vector.broadcast %cst_12 : f32 to vector<8x1xf32>
    %23 = arith.addf %19, %22 : vector<8x1xf32>
    %24 = math.rsqrt %23 : vector<8x1xf32>
    %25 = vector.broadcast %24 : vector<8x1xf32> to vector<8x32xf32>
    %26 = arith.mulf %21, %25 : vector<8x32xf32>
    %27 = vector.broadcast %6 : vector<1x32xf32> to vector<8x32xf32>
    %28 = arith.mulf %26, %27 : vector<8x32xf32>
    %29 = vector.broadcast %8 : vector<1x32xf32> to vector<8x32xf32>
    %30 = arith.addf %28, %29 : vector<8x32xf32>
    %31 = arith.truncf %30 : vector<8x32xf32> to vector<8x32xbf16>
    %c0_13 = arith.constant 0 : index
    %c0_14 = arith.constant 0 : index
    %c0_15 = arith.constant 0 : index
    %32 = vector.load %arg5[%c0_13, %c0_14, %c0_15] : memref<1x32x96xbf16, #tpu.memory_space<vmem>>, vector<1x32x96xbf16>
    %33 = vector.shape_cast %32 : vector<1x32x96xbf16> to vector<32x96xbf16>
    %cst_16 = arith.constant dense<0.000000e+00> : vector<8x96xf32>
    %34 = tpu.matmul %31, %33, %cst_16 {dimension_numbers = #tpu.dot_dimension_numbers<[1], [0], [0], [1], [0, 0, 1, 1], [], []>} : vector<8x32xbf16>, vector<32x96xbf16>, vector<8x96xf32> -> vector<8x96xf32>
    %c0_17 = arith.constant 0 : index
    %c0_18 = arith.constant 0 : index
    %c0_19 = arith.constant 0 : index
    %35 = vector.load %arg6[%c0_17, %c0_18, %c0_19] : memref<1x1x96xf32, #tpu.memory_space<vmem>>, vector<1x1x96xf32>
    %36 = vector.shape_cast %35 : vector<1x1x96xf32> to vector<1x96xf32>
    %37 = vector.broadcast %36 : vector<1x96xf32> to vector<8x96xf32>
    %38 = arith.addf %34, %37 : vector<8x96xf32>
    %39 = vector.extract_strided_slice %38 {offsets = [0, 0], sizes = [8, 32], strides = [1, 1]} : vector<8x96xf32> to vector<8x32xf32>
    %40 = vector.extract_strided_slice %38 {offsets = [0, 32], sizes = [8, 32], strides = [1, 1]} : vector<8x96xf32> to vector<8x32xf32>
    %41 = vector.extract_strided_slice %38 {offsets = [0, 64], sizes = [8, 32], strides = [1, 1]} : vector<8x96xf32> to vector<8x32xf32>
    %42 = vector.extract_strided_slice %39 {offsets = [0, 0], sizes = [8, 8], strides = [1, 1]} : vector<8x32xf32> to vector<8x8xf32>
    %43 = arith.truncf %42 : vector<8x8xf32> to vector<8x8xbf16>
    %44 = vector.extract_strided_slice %40 {offsets = [0, 0], sizes = [8, 8], strides = [1, 1]} : vector<8x32xf32> to vector<8x8xf32>
    %45 = arith.truncf %44 : vector<8x8xf32> to vector<8x8xbf16>
    %46 = vector.extract_strided_slice %41 {offsets = [0, 0], sizes = [8, 8], strides = [1, 1]} : vector<8x32xf32> to vector<8x8xf32>
    %47 = arith.truncf %46 : vector<8x8xf32> to vector<8x8xbf16>
    %cst_20 = arith.constant dense<0.000000e+00> : vector<8x8xf32>
    %48 = tpu.matmul %43, %45, %cst_20 {dimension_numbers = #tpu.dot_dimension_numbers<[1], [1], [0], [0], [0, 0, 1, 0], [], []>} : vector<8x8xbf16>, vector<8x8xbf16>, vector<8x8xf32> -> vector<8x8xf32>
    %cst_21 = arith.constant dense<0xFF800000> : vector<8xf32>
    %49 = vector.multi_reduction <maximumf>, %48, %cst_21 [1] : vector<8x8xf32> to vector<8xf32>
    %50 = vector.shape_cast %49 : vector<8xf32> to vector<8x1xf32>
    %51 = vector.broadcast %50 : vector<8x1xf32> to vector<8x8xf32>
    %52 = arith.subf %48, %51 : vector<8x8xf32>
    %53 = math.exp %52 : vector<8x8xf32>
    %cst_22 = arith.constant dense<0.000000e+00> : vector<8xf32>
    %54 = vector.multi_reduction <add>, %53, %cst_22 [1] : vector<8x8xf32> to vector<8xf32>
    %55 = vector.shape_cast %54 : vector<8xf32> to vector<8x1xf32>
    %56 = tpu.reciprocal %55 {approx = true} : vector<8x1xf32> -> vector<8x1xf32>
    %57 = vector.broadcast %56 : vector<8x1xf32> to vector<8x8xf32>
    %58 = arith.mulf %53, %57 : vector<8x8xf32>
    %59 = arith.truncf %58 : vector<8x8xf32> to vector<8x8xbf16>
    %cst_23 = arith.constant dense<0.000000e+00> : vector<8x8xf32>
    %60 = tpu.matmul %59, %47, %cst_23 {dimension_numbers = #tpu.dot_dimension_numbers<[1], [0], [0], [1], [0, 0, 1, 1], [], []>} : vector<8x8xbf16>, vector<8x8xbf16>, vector<8x8xf32> -> vector<8x8xf32>
    %61 = vector.extract_strided_slice %39 {offsets = [0, 8], sizes = [8, 8], strides = [1, 1]} : vector<8x32xf32> to vector<8x8xf32>
    %62 = arith.truncf %61 : vector<8x8xf32> to vector<8x8xbf16>
    %63 = vector.extract_strided_slice %40 {offsets = [0, 8], sizes = [8, 8], strides = [1, 1]} : vector<8x32xf32> to vector<8x8xf32>
    %64 = arith.truncf %63 : vector<8x8xf32> to vector<8x8xbf16>
    %65 = vector.extract_strided_slice %41 {offsets = [0, 8], sizes = [8, 8], strides = [1, 1]} : vector<8x32xf32> to vector<8x8xf32>
    %66 = arith.truncf %65 : vector<8x8xf32> to vector<8x8xbf16>
    %cst_24 = arith.constant dense<0.000000e+00> : vector<8x8xf32>
    %67 = tpu.matmul %62, %64, %cst_24 {dimension_numbers = #tpu.dot_dimension_numbers<[1], [1], [0], [0], [0, 0, 1, 0], [], []>} : vector<8x8xbf16>, vector<8x8xbf16>, vector<8x8xf32> -> vector<8x8xf32>
    %cst_25 = arith.constant dense<0xFF800000> : vector<8xf32>
    %68 = vector.multi_reduction <maximumf>, %67, %cst_25 [1] : vector<8x8xf32> to vector<8xf32>
    %69 = vector.shape_cast %68 : vector<8xf32> to vector<8x1xf32>
    %70 = vector.broadcast %69 : vector<8x1xf32> to vector<8x8xf32>
    %71 = arith.subf %67, %70 : vector<8x8xf32>
    %72 = math.exp %71 : vector<8x8xf32>
    %cst_26 = arith.constant dense<0.000000e+00> : vector<8xf32>
    %73 = vector.multi_reduction <add>, %72, %cst_26 [1] : vector<8x8xf32> to vector<8xf32>
    %74 = vector.shape_cast %73 : vector<8xf32> to vector<8x1xf32>
    %75 = tpu.reciprocal %74 {approx = true} : vector<8x1xf32> -> vector<8x1xf32>
    %76 = vector.broadcast %75 : vector<8x1xf32> to vector<8x8xf32>
    %77 = arith.mulf %72, %76 : vector<8x8xf32>
    %78 = arith.truncf %77 : vector<8x8xf32> to vector<8x8xbf16>
    %cst_27 = arith.constant dense<0.000000e+00> : vector<8x8xf32>
    %79 = tpu.matmul %78, %66, %cst_27 {dimension_numbers = #tpu.dot_dimension_numbers<[1], [0], [0], [1], [0, 0, 1, 1], [], []>} : vector<8x8xbf16>, vector<8x8xbf16>, vector<8x8xf32> -> vector<8x8xf32>
    %80 = vector.extract_strided_slice %39 {offsets = [0, 16], sizes = [8, 8], strides = [1, 1]} : vector<8x32xf32> to vector<8x8xf32>
    %81 = arith.truncf %80 : vector<8x8xf32> to vector<8x8xbf16>
    %82 = vector.extract_strided_slice %40 {offsets = [0, 16], sizes = [8, 8], strides = [1, 1]} : vector<8x32xf32> to vector<8x8xf32>
    %83 = arith.truncf %82 : vector<8x8xf32> to vector<8x8xbf16>
    %84 = vector.extract_strided_slice %41 {offsets = [0, 16], sizes = [8, 8], strides = [1, 1]} : vector<8x32xf32> to vector<8x8xf32>
    %85 = arith.truncf %84 : vector<8x8xf32> to vector<8x8xbf16>
    %cst_28 = arith.constant dense<0.000000e+00> : vector<8x8xf32>
    %86 = tpu.matmul %81, %83, %cst_28 {dimension_numbers = #tpu.dot_dimension_numbers<[1], [1], [0], [0], [0, 0, 1, 0], [], []>} : vector<8x8xbf16>, vector<8x8xbf16>, vector<8x8xf32> -> vector<8x8xf32>
    %cst_29 = arith.constant dense<0xFF800000> : vector<8xf32>
    %87 = vector.multi_reduction <maximumf>, %86, %cst_29 [1] : vector<8x8xf32> to vector<8xf32>
    %88 = vector.shape_cast %87 : vector<8xf32> to vector<8x1xf32>
    %89 = vector.broadcast %88 : vector<8x1xf32> to vector<8x8xf32>
    %90 = arith.subf %86, %89 : vector<8x8xf32>
    %91 = math.exp %90 : vector<8x8xf32>
    %cst_30 = arith.constant dense<0.000000e+00> : vector<8xf32>
    %92 = vector.multi_reduction <add>, %91, %cst_30 [1] : vector<8x8xf32> to vector<8xf32>
    %93 = vector.shape_cast %92 : vector<8xf32> to vector<8x1xf32>
    %94 = tpu.reciprocal %93 {approx = true} : vector<8x1xf32> -> vector<8x1xf32>
    %95 = vector.broadcast %94 : vector<8x1xf32> to vector<8x8xf32>
    %96 = arith.mulf %91, %95 : vector<8x8xf32>
    %97 = arith.truncf %96 : vector<8x8xf32> to vector<8x8xbf16>
    %cst_31 = arith.constant dense<0.000000e+00> : vector<8x8xf32>
    %98 = tpu.matmul %97, %85, %cst_31 {dimension_numbers = #tpu.dot_dimension_numbers<[1], [0], [0], [1], [0, 0, 1, 1], [], []>} : vector<8x8xbf16>, vector<8x8xbf16>, vector<8x8xf32> -> vector<8x8xf32>
    %99 = vector.extract_strided_slice %39 {offsets = [0, 24], sizes = [8, 8], strides = [1, 1]} : vector<8x32xf32> to vector<8x8xf32>
    %100 = arith.truncf %99 : vector<8x8xf32> to vector<8x8xbf16>
    %101 = vector.extract_strided_slice %40 {offsets = [0, 24], sizes = [8, 8], strides = [1, 1]} : vector<8x32xf32> to vector<8x8xf32>
    %102 = arith.truncf %101 : vector<8x8xf32> to vector<8x8xbf16>
    %103 = vector.extract_strided_slice %41 {offsets = [0, 24], sizes = [8, 8], strides = [1, 1]} : vector<8x32xf32> to vector<8x8xf32>
    %104 = arith.truncf %103 : vector<8x8xf32> to vector<8x8xbf16>
    %cst_32 = arith.constant dense<0.000000e+00> : vector<8x8xf32>
    %105 = tpu.matmul %100, %102, %cst_32 {dimension_numbers = #tpu.dot_dimension_numbers<[1], [1], [0], [0], [0, 0, 1, 0], [], []>} : vector<8x8xbf16>, vector<8x8xbf16>, vector<8x8xf32> -> vector<8x8xf32>
    %cst_33 = arith.constant dense<0xFF800000> : vector<8xf32>
    %106 = vector.multi_reduction <maximumf>, %105, %cst_33 [1] : vector<8x8xf32> to vector<8xf32>
    %107 = vector.shape_cast %106 : vector<8xf32> to vector<8x1xf32>
    %108 = vector.broadcast %107 : vector<8x1xf32> to vector<8x8xf32>
    %109 = arith.subf %105, %108 : vector<8x8xf32>
    %110 = math.exp %109 : vector<8x8xf32>
    %cst_34 = arith.constant dense<0.000000e+00> : vector<8xf32>
    %111 = vector.multi_reduction <add>, %110, %cst_34 [1] : vector<8x8xf32> to vector<8xf32>
    %112 = vector.shape_cast %111 : vector<8xf32> to vector<8x1xf32>
    %113 = tpu.reciprocal %112 {approx = true} : vector<8x1xf32> -> vector<8x1xf32>
    %114 = vector.broadcast %113 : vector<8x1xf32> to vector<8x8xf32>
    %115 = arith.mulf %110, %114 : vector<8x8xf32>
    %116 = arith.truncf %115 : vector<8x8xf32> to vector<8x8xbf16>
    %cst_35 = arith.constant dense<0.000000e+00> : vector<8x8xf32>
    %117 = tpu.matmul %116, %104, %cst_35 {dimension_numbers = #tpu.dot_dimension_numbers<[1], [0], [0], [1], [0, 0, 1, 1], [], []>} : vector<8x8xbf16>, vector<8x8xbf16>, vector<8x8xf32> -> vector<8x8xf32>
    %118 = tpu.concatenate %60, %79, %98, %117 in 1 : vector<8x8xf32>, vector<8x8xf32>, vector<8x8xf32>, vector<8x8xf32> -> vector<8x32xf32>
    %119 = arith.truncf %118 : vector<8x32xf32> to vector<8x32xbf16>
    %c0_36 = arith.constant 0 : index
    %c0_37 = arith.constant 0 : index
    %c0_38 = arith.constant 0 : index
    %120 = vector.load %arg7[%c0_36, %c0_37, %c0_38] : memref<1x32x32xbf16, #tpu.memory_space<vmem>>, vector<1x32x32xbf16>
    %121 = vector.shape_cast %120 : vector<1x32x32xbf16> to vector<32x32xbf16>
    %cst_39 = arith.constant dense<0.000000e+00> : vector<8x32xf32>
    %122 = tpu.matmul %119, %121, %cst_39 {dimension_numbers = #tpu.dot_dimension_numbers<[1], [0], [0], [1], [0, 0, 1, 1], [], []>} : vector<8x32xbf16>, vector<32x32xbf16>, vector<8x32xf32> -> vector<8x32xf32>
    %c0_40 = arith.constant 0 : index
    %c0_41 = arith.constant 0 : index
    %c0_42 = arith.constant 0 : index
    %123 = vector.load %arg8[%c0_40, %c0_41, %c0_42] : memref<1x1x32xf32, #tpu.memory_space<vmem>>, vector<1x1x32xf32>
    %124 = vector.shape_cast %123 : vector<1x1x32xf32> to vector<1x32xf32>
    %125 = vector.broadcast %124 : vector<1x32xf32> to vector<8x32xf32>
    %126 = arith.addf %122, %125 : vector<8x32xf32>
    %127 = arith.addf %4, %126 : vector<8x32xf32>
    %c0_43 = arith.constant 0 : index
    %c0_44 = arith.constant 0 : index
    %c0_45 = arith.constant 0 : index
    %128 = vector.load %arg9[%c0_43, %c0_44, %c0_45] : memref<1x1x32xf32, #tpu.memory_space<vmem>>, vector<1x1x32xf32>
    %129 = vector.shape_cast %128 : vector<1x1x32xf32> to vector<1x32xf32>
    %c0_46 = arith.constant 0 : index
    %c0_47 = arith.constant 0 : index
    %c0_48 = arith.constant 0 : index
    %130 = vector.load %arg10[%c0_46, %c0_47, %c0_48] : memref<1x1x32xf32, #tpu.memory_space<vmem>>, vector<1x1x32xf32>
    %131 = vector.shape_cast %130 : vector<1x1x32xf32> to vector<1x32xf32>
    %cst_49 = arith.constant dense<0.000000e+00> : vector<8xf32>
    %132 = vector.multi_reduction <add>, %127, %cst_49 [1] : vector<8x32xf32> to vector<8xf32>
    %133 = vector.shape_cast %132 : vector<8xf32> to vector<8x1xf32>
    %cst_50 = arith.constant 3.200000e+01 : f32
    %134 = vector.broadcast %cst_50 : f32 to vector<8x1xf32>
    %135 = arith.divf %133, %134 : vector<8x1xf32>
    %136 = vector.broadcast %135 : vector<8x1xf32> to vector<8x32xf32>
    %137 = arith.subf %127, %136 : vector<8x32xf32>
    %138 = arith.mulf %137, %137 : vector<8x32xf32>
    %cst_51 = arith.constant dense<0.000000e+00> : vector<8xf32>
    %139 = vector.multi_reduction <add>, %138, %cst_51 [1] : vector<8x32xf32> to vector<8xf32>
    %140 = vector.shape_cast %139 : vector<8xf32> to vector<8x1xf32>
    %cst_52 = arith.constant 3.200000e+01 : f32
    %141 = vector.broadcast %cst_52 : f32 to vector<8x1xf32>
    %142 = arith.divf %140, %141 : vector<8x1xf32>
    %143 = vector.broadcast %135 : vector<8x1xf32> to vector<8x32xf32>
    %144 = arith.subf %127, %143 : vector<8x32xf32>
    %cst_53 = arith.constant 9.99999974E-6 : f32
    %145 = vector.broadcast %cst_53 : f32 to vector<8x1xf32>
    %146 = arith.addf %142, %145 : vector<8x1xf32>
    %147 = math.rsqrt %146 : vector<8x1xf32>
    %148 = vector.broadcast %147 : vector<8x1xf32> to vector<8x32xf32>
    %149 = arith.mulf %144, %148 : vector<8x32xf32>
    %150 = vector.broadcast %129 : vector<1x32xf32> to vector<8x32xf32>
    %151 = arith.mulf %149, %150 : vector<8x32xf32>
    %152 = vector.broadcast %131 : vector<1x32xf32> to vector<8x32xf32>
    %153 = arith.addf %151, %152 : vector<8x32xf32>
    %154 = arith.truncf %153 : vector<8x32xf32> to vector<8x32xbf16>
    %c0_54 = arith.constant 0 : index
    %c0_55 = arith.constant 0 : index
    %c0_56 = arith.constant 0 : index
    %155 = vector.load %arg11[%c0_54, %c0_55, %c0_56] : memref<1x32x128xbf16, #tpu.memory_space<vmem>>, vector<1x32x128xbf16>
    %156 = vector.shape_cast %155 : vector<1x32x128xbf16> to vector<32x128xbf16>
    %cst_57 = arith.constant dense<0.000000e+00> : vector<8x128xf32>
    %157 = tpu.matmul %154, %156, %cst_57 {dimension_numbers = #tpu.dot_dimension_numbers<[1], [0], [0], [1], [0, 0, 1, 1], [], []>} : vector<8x32xbf16>, vector<32x128xbf16>, vector<8x128xf32> -> vector<8x128xf32>
    %c0_58 = arith.constant 0 : index
    %c0_59 = arith.constant 0 : index
    %c0_60 = arith.constant 0 : index
    %158 = vector.load %arg12[%c0_58, %c0_59, %c0_60] : memref<1x1x128xf32, #tpu.memory_space<vmem>>, vector<1x1x128xf32>
    %159 = vector.shape_cast %158 : vector<1x1x128xf32> to vector<1x128xf32>
    %160 = vector.broadcast %159 : vector<1x128xf32> to vector<8x128xf32>
    %161 = arith.addf %157, %160 : vector<8x128xf32>
    %cst_61 = arith.constant 1.702000e+00 : f32
    %162 = vector.broadcast %cst_61 : f32 to vector<8x128xf32>
    %163 = arith.mulf %162, %161 : vector<8x128xf32>
    %164 = arith.negf %163 : vector<8x128xf32>
    %165 = math.exp %164 : vector<8x128xf32>
    %cst_62 = arith.constant 1.000000e+00 : f32
    %166 = vector.broadcast %cst_62 : f32 to vector<8x128xf32>
    %167 = arith.addf %166, %165 : vector<8x128xf32>
    %168 = arith.divf %166, %167 : vector<8x128xf32>
    %169 = arith.mulf %161, %168 : vector<8x128xf32>
    %170 = arith.truncf %169 : vector<8x128xf32> to vector<8x128xbf16>
    %c0_63 = arith.constant 0 : index
    %c0_64 = arith.constant 0 : index
    %c0_65 = arith.constant 0 : index
    %171 = vector.load %arg13[%c0_63, %c0_64, %c0_65] : memref<1x128x32xbf16, #tpu.memory_space<vmem>>, vector<1x128x32xbf16>
    %172 = vector.shape_cast %171 : vector<1x128x32xbf16> to vector<128x32xbf16>
    %cst_66 = arith.constant dense<0.000000e+00> : vector<8x32xf32>
    %173 = tpu.matmul %170, %172, %cst_66 {dimension_numbers = #tpu.dot_dimension_numbers<[1], [0], [0], [1], [0, 0, 1, 1], [], []>} : vector<8x128xbf16>, vector<128x32xbf16>, vector<8x32xf32> -> vector<8x32xf32>
    %c0_67 = arith.constant 0 : index
    %c0_68 = arith.constant 0 : index
    %c0_69 = arith.constant 0 : index
    %174 = vector.load %arg14[%c0_67, %c0_68, %c0_69] : memref<1x1x32xf32, #tpu.memory_space<vmem>>, vector<1x1x32xf32>
    %175 = vector.shape_cast %174 : vector<1x1x32xf32> to vector<1x32xf32>
    %176 = vector.broadcast %175 : vector<1x32xf32> to vector<8x32xf32>
    %177 = arith.addf %173, %176 : vector<8x32xf32>
    %178 = arith.addf %127, %177 : vector<8x32xf32>
    %c0_70 = arith.constant 0 : index
    %c0_71 = arith.constant 0 : index
    %c0_72 = arith.constant 0 : index
    %179 = vector.load %arg15[%c0_70, %c0_71, %c0_72] : memref<1x8x32xf32, #tpu.memory_space<vmem>>, vector<1x8x32xf32>
    %180 = vector.shape_cast %179 : vector<1x8x32xf32> to vector<8x32xf32>
    %181 = vector.shape_cast %178 : vector<8x32xf32> to vector<1x8x32xf32>
    tpu.vector_store %arg15[%c0_70, %c0_71, %c0_72], %181 {strides = array<i32>} : memref<1x8x32xf32, #tpu.memory_space<vmem>>, vector<1x8x32xf32>,
    return
  }
  func.func @transform_0(%arg0: i32, %arg1: i32) -> (i32, i32, i32) {
    %c0_i32 = arith.constant 0 : i32
    %c0_i32_0 = arith.constant 0 : i32
    %c0_i32_1 = arith.constant 0 : i32
    return %arg0, %c0_i32, %c0_i32_0 : i32, i32, i32
  }
  func.func @transform_1(%arg0: i32, %arg1: i32) -> (i32, i32, i32) {
    %c0_i32 = arith.constant 0 : i32
    %c0_i32_0 = arith.constant 0 : i32
    %c0_i32_1 = arith.constant 0 : i32
    return %arg1, %c0_i32, %c0_i32_0 : i32, i32, i32
  }
  func.func @transform_2(%arg0: i32, %arg1: i32) -> (i32, i32, i32) {
    %c0_i32 = arith.constant 0 : i32
    %c0_i32_0 = arith.constant 0 : i32
    %c0_i32_1 = arith.constant 0 : i32
    return %arg1, %c0_i32, %c0_i32_0 : i32, i32, i32
  }
  func.func @transform_3(%arg0: i32, %arg1: i32) -> (i32, i32, i32) {
    %c0_i32 = arith.constant 0 : i32
    %c0_i32_0 = arith.constant 0 : i32
    %c0_i32_1 = arith.constant 0 : i32
    return %arg1, %c0_i32, %c0_i32_0 : i32, i32, i32
  }
  func.func @transform_4(%arg0: i32, %arg1: i32) -> (i32, i32, i32) {
    %c0_i32 = arith.constant 0 : i32
    %c0_i32_0 = arith.constant 0 : i32
    %c0_i32_1 = arith.constant 0 : i32
    return %arg1, %c0_i32, %c0_i32_0 : i32, i32, i32
  }
  func.func @transform_5(%arg0: i32, %arg1: i32) -> (i32, i32, i32) {
    %c0_i32 = arith.constant 0 : i32
    %c0_i32_0 = arith.constant 0 : i32
    %c0_i32_1 = arith.constant 0 : i32
    return %arg1, %c0_i32, %c0_i32_0 : i32, i32, i32
  }
  func.func @transform_6(%arg0: i32, %arg1: i32) -> (i32, i32, i32) {
    %c0_i32 = arith.constant 0 : i32
    %c0_i32_0 = arith.constant 0 : i32
    %c0_i32_1 = arith.constant 0 : i32
    return %arg1, %c0_i32, %c0_i32_0 : i32, i32, i32
  }
  func.func @transform_7(%arg0: i32, %arg1: i32) -> (i32, i32, i32) {
    %c0_i32 = arith.constant 0 : i32
    %c0_i32_0 = arith.constant 0 : i32
    %c0_i32_1 = arith.constant 0 : i32
    return %arg1, %c0_i32, %c0_i32_0 : i32, i32, i32
  }
  func.func @transform_8(%arg0: i32, %arg1: i32) -> (i32, i32, i32) {
    %c0_i32 = arith.constant 0 : i32
    %c0_i32_0 = arith.constant 0 : i32
    %c0_i32_1 = arith.constant 0 : i32
    return %arg1, %c0_i32, %c0_i32_0 : i32, i32, i32
  }
  func.func @transform_9(%arg0: i32, %arg1: i32) -> (i32, i32, i32) {
    %c0_i32 = arith.constant 0 : i32
    %c0_i32_0 = arith.constant 0 : i32
    %c0_i32_1 = arith.constant 0 : i32
    return %arg1, %c0_i32, %c0_i32_0 : i32, i32, i32
  }
  func.func @transform_10(%arg0: i32, %arg1: i32) -> (i32, i32, i32) {
    %c0_i32 = arith.constant 0 : i32
    %c0_i32_0 = arith.constant 0 : i32
    %c0_i32_1 = arith.constant 0 : i32
    return %arg1, %c0_i32, %c0_i32_0 : i32, i32, i32
  }
  func.func @transform_11(%arg0: i32, %arg1: i32) -> (i32, i32, i32) {
    %c0_i32 = arith.constant 0 : i32
    %c0_i32_0 = arith.constant 0 : i32
    %c0_i32_1 = arith.constant 0 : i32
    return %arg1, %c0_i32, %c0_i32_0 : i32, i32, i32
  }
  func.func @transform_12(%arg0: i32, %arg1: i32) -> (i32, i32, i32) {
    %c0_i32 = arith.constant 0 : i32
    %c0_i32_0 = arith.constant 0 : i32
    %c0_i32_1 = arith.constant 0 : i32
    return %arg1, %c0_i32, %c0_i32_0 : i32, i32, i32
  }
  func.func @transform_13(%arg0: i32, %arg1: i32) -> (i32, i32, i32) {
    %c0_i32 = arith.constant 0 : i32
    %c0_i32_0 = arith.constant 0 : i32
    %c0_i32_1 = arith.constant 0 : i32
    return %arg0, %c0_i32, %c0_i32_0 : i32, i32, i32
  }
}

</mosaic_0001>

<bundles_post_ra>
// kernel: tpu_custom_call.1
= control target key start
LH: loop header
LB: loop body
LE: loop exit
PB: predicated region body
PF: predicated region fallthrough
CT: control target
= control target key end

     0   :  { %s2100_s0 = inlined_call_operand.vmem [shape: f32[2,8,32], index: 0, kind: input, shape index: {}]   ;;  %s2101_s1 = inlined_call_operand.vmem [shape: f32[2,1,32], index: 1, kind: input, shape index: {}]   ;;  %s2102_s2 = inlined_call_operand.vmem [shape: f32[2,1,32], index: 2, kind: input, shape index: {}]   ;;  %s2103_s3 = inlined_call_operand.vmem [shape: bf16[2,32,96], index: 3, kind: input, shape index: {}]   ;;  %s2104_s4 = inlined_call_operand.vmem [shape: f32[2,1,96], index: 4, kind: input, shape index: {}]   ;;  %s2105_s5 = inlined_call_operand.vmem [shape: bf16[2,32,32], index: 5, kind: input, shape index: {}]   ;;  %s2106_s6 = inlined_call_operand.vmem [shape: f32[2,1,32], index: 6, kind: input, shape index: {}]   ;;  %s2107_s7 = inlined_call_operand.vmem [shape: f32[2,1,32], index: 7, kind: input, shape index: {}]   ;;  %s2108_s8 = inlined_call_operand.vmem [shape: f32[2,1,32], index: 8, kind: input, shape index: {}]   ;;  %s2109_s9 = inlined_call_operand.vmem [shape: bf16[2,32,128], index: 9, kind: input, shape index: {}]   ;;  %s2110_s10 = inlined_call_operand.vmem [shape: f32[2,1,128], index: 10, kind: input, shape index: {}]   ;;  %s2111_s11 = inlined_call_operand.vmem [shape: bf16[2,128,32], index: 11, kind: input, shape index: {}]   ;;  %s2112_s12 = inlined_call_operand.vmem [shape: f32[2,1,32], index: 12, kind: input, shape index: {}]   ;;  %s2113_s13 = inlined_call_operand.hbm [shape: f32[2,8,32], index: 13, kind: output, shape index: {}]  }
   0x1   :  { %2129 = sst [smem:[#allocation18_spill]] %s2100_s0 }
   0x2   :  { %2130 = sst [smem:[#allocation19_spill]] %s2103_s3 }
   0x3   :  { %2131 = sst [smem:[#allocation20_spill]] %s2105_s5 }
   0x4   :  { %2132 = sst [smem:[#allocation21_spill]] %s2107_s7 }
   0x5   :  { %2133 = sst [smem:[#allocation22_spill]] %s2111_s11 }
   0x6   :  { %2134 = sst [smem:[#allocation23_spill]] %s2113_s13 }
   0x7   :  { %18 = vsyncpa [#allocation3], 0 }
   0x8   :  { %20 = vsyncpa [#allocation3 + $0x1], 0  ;;  %s1794_s25 = smov 0   ;;  %s1796_s26 = smov 0  }
   0x9   :  { %s1798_s27 = smov 0   ;;  %s1800_s28 = smov 0  }
   0xa   :  { %s1802_s29 = smov 0   ;;  %s1804_s30 = smov 0  }
   0xb   :  { %s1806_s14 = smov 0   ;;  %s1808_s15 = smov 0  }
   0xc LB: > { %2135 = sst [smem:[#allocation5_spill]] %s1679_s25  ;;  %s1387_s16 = sadd.s32 4294967295, %s1707_s15   ;;  %s1707_s15 = sphi %s1808_s15, %s26_s15   ;;  %s1703_s14 = sphi %s1806_s14, %s2177_s14   ;;  %s1699_s30 = sphi %s1804_s30, %s2176_s30   ;;  %s1695_s29 = sphi %s1802_s29, %s2175_s29   ;;  %s1691_s28 = sphi %s1800_s28, %s2174_s28   ;;  %s1687_s27 = sphi %s1798_s27, %s2173_s27   ;;  %s1683_s26 = sphi %s1796_s26, %s2172_s26   ;;  %s1679_s25 = sphi %s1794_s25, %s2171_s25  }
   0xd   : > { %2136 = sst [smem:[#allocation6_spill]] %s1683_s26  ;;  %s1388_s17 = sadd.s32 4294967294, %s1707_s15  }
   0xe   : > { %2137 = sst [smem:[#allocation7_spill]] %s1687_s27  ;;  %s35_s18 = sadd.s32 1, %s1699_s30 }
   0xf   : > { %2138 = sst [smem:[#allocation8_spill]] %s1691_s28  ;;  %p36_p0 = scmp.ge.s32.totalorder %s35_s18, 2 }
  0x10   : > { %2139 = sst [smem:[#allocation9_spill]] %s1695_s29  ;;  %s38_s19 = sadd.s32 1, %s1703_s14 }
  0x11   : > { %2140 = sst [smem:[#allocation10_spill]] %s1699_s30  ;;  %p393_p1 = scmp.ne.s32.totalorder %s1687_s27, %s1683_s26 }
  0x12   : > { %2141 = sst [smem:[#allocation11_spill]] %s1703_s14  ;;  %p394_p2 = scmp.eq.s32.totalorder %s1387_s16, 3 }
  0x13   : > { %2142 = sst [smem:[#allocation12_spill]] %s1707_s15  ;;  %s2179_s18 = smov (%p36_p0, %s35_s18), 0 }
  0x14   : > { %2143 = sst [smem:[#allocation13_spill]] %s2179_s18  ;;  %s2181_s19 = smov (!%p36_p0, %s38_s19), %s1703_s14 }
  0x15   : > { %p1843_p3 = por %p394_p2, %p393_p1  ;;  %p399_p4 = scmp.ne.s32.totalorder %s1683_s26, %s1679_s25 }
  0x16   : > { %p40_p5 = scmp.ge.s32.totalorder %s2181_s19, 2  ;;  %p400_p6 = scmp.eq.s32.totalorder %s1388_s17, 3 }
  0x17   : > { %s2144_s20 = scalar_select %p1843_p3, 1, 0 }
  0x18   : > { %p1391_p7 = scmp.ge.s32.totalorder %s1707_s15, 1  ;;  %p505_p8 = scmp.lt.s32.totalorder %s1707_s15, 5 }
  0x19   : > { %2145 = sst [smem:[#allocation14_spill]] %s2144_s20  ;;  %s2183_s19 = smov (%p40_p5, %s2181_s19), 0 }
  0x1a   : > { %2146 = sst [smem:[#allocation15_spill]] %s2183_s19  ;;  %p1853_p9 = por %p400_p6, %p399_p4 }
  0x1b   : > { %p506_p10 = pnand %p1391_p7, %p505_p8  ;;  %s380_s22 = ssub.s32 %s1703_s14, %s2183_s19 }
  0x1c   : > { %s2147_s21 = scalar_select %p1853_p9, 1, 0 }
  0x1d   : > { %s383_s23 = sadd.s32 1, %s1687_s27  ;;  %p381_p11 = scmp.eq.s32.totalorder %s380_s22, 0 }
  0x1e   : > { %2148 = sst [smem:[#allocation16_spill]] %s2147_s21  ;;  %509 = sbr.rel (%p506_p10) target bundleno = 2369 (0x941), region = 72 }
  0x1f   : > { %s1861_s24 = scalar_select %p381_p11, %s1687_s27, %s383_s23  }
  0x20   : > { %s2117_s16 = sand.u32 (!%p506_p10), 1, %s1683_s26   ;;  %p592_p12 = scmp.lt.s32.totalorder (!%p506_p10), %s1695_s29, 1 }
  0x21   : > { %2149 = sst [smem:[#allocation17_spill]] %s1861_s24  ;;  %s1392_s17 = sshll.u32 (!%p506_p10), %s2117_s16, 3 }
  0x22   : > { %p596_p13 = scmp.lt.s32.totalorder (!%p506_p10), %s1691_s28, 1  ;;  %s2150_s0 = sld [smem:[#allocation18_spill]] (!%p506_p10) }
  0x23   : > { %s593_s18 = scalar_select %p592_p12, %s1695_s29, 1 }
  0x24   : > { %s1870_s30 = scalar_select %p596_p13, %s1691_s28, 1 }
  0x25   : > { %s1393_s22 = sshll.u32 %s593_s18, 3  ;;  %s2151_s3 = sld [smem:[#allocation19_spill]] }
  0x26   : > { %s1475_s13 = sshll.u32 %s1870_s30, 4  ;;  %s2152_s5 = sld [smem:[#allocation20_spill]] }
  0x27   : > { %s1913_s18 = scalar_lea.vmem %s2109_s9, %s1475_s13  ;;  %s631_s11 = scalar_lea.vmem %s2110_s10, %s1870_s30 }
  0x28   : > { %s595_s14 = scalar_lea.vmem %s2150_s0, %s1393_s22  ;;  %s623_s0 = scalar_lea.vmem %s2108_s8, %s1870_s30 }
  0x29   : > { %s639_s25 = scalar_lea.vmem %s2112_s12, %s1870_s30  ;;  %s2154_s27 = sld [smem:[#allocation22_spill]] }
  0x2a   : > { %s1929_s26 = scalar_lea.vmem [#allocation2], %s1392_s17  ;;  %s2155_s20 = sld [smem:[#allocation8_spill]] }
  0x2b   : > { %s1887_s29 = scalar_lea.vmem %s2151_s3, %s1475_s13 }
  0x2c   : > { %s1896_s23 = scalar_lea.vmem %s2152_s5, %s1475_s13  ;;  %s1478_s5 = sshll.u32 %s1870_s30, 6 }
  0x2f   : > { %s1927_s7 = scalar_lea.vmem %s2154_s27, %s1478_s5 }
  0x30   : > { %p1402_p0 = scmp.ne.s32.totalorder %s2155_s20, 0 }
  0x32   : > { %644 = sbr.rel (%p1402_p0) target bundleno = 57 (0x39), region = 76 }
  0x37   : > { %v645_v0 = vld [vmem:[%s595_s14] sm:$0xff]  ;;  %vm646_vm0 = vcmask 261120  }
  0x38   : > { %647 = vst.msk [vmem:[%s1929_s26] sm:$0xff] %vm646_vm0, %v645_v0 }
  0x39 PF: > { %vm651_vm1 = vcmask 261120   ;;  %v1709_v3 = vmov 32.0   ;;  %v1480_v15 = vld [vmem:[%s1887_s29 + $0x8] sm:$0xff]  ;;  %v1479_v16 = vld [vmem:[%s1887_s29] sm:$0xff]  ;;  %s2156_s13 = scalar_lea.vmem %s2101_s1, %s1870_s30  ;;  %s2157_s14 = scalar_lea.vmem %s2102_s2, %s1870_s30  ;;  %vm767_vm6 = vcmask 1043456   ;;  %vm730_vm7 = vcmask 64512  }
  0x3a   : > { %1587 = vrcp.f32 %v1709_v3  ;;  %719 = vmatpush.bf16.msra.mxu0 %v1480_v15  ;;  %v1579_v26 = vld [vmem:[%s2156_s13] ss:$0 sm:$0xff]  ;;  %s2158_s19 = scalar_lea.vmem %s2104_s4, %s1870_s30  ;;  %s1710_s22 = smov 88   ;;  %vm965_vm8 = vcmask 130048   ;;  %vm967_vm9 = vcmask 195584  }
  0x3b   : > { %v1580_v29 = vld [vmem:[%s2157_s14] ss:$0 sm:$0xff]  ;;  %s1711_s24 = smov 64   ;;  %s1712_s16 = smov 96  }
  0x3c   : > { %v1581_v33 = vld [vmem:[%s2158_s19] ss:$0 sm:$0xff]  ;;  %s1713_s15 = smov 72   ;;  %s1714_s21 = smov 80  }
  0x3d   : > { %s1715_s20 = smov 120   ;;  %s1716_s3 = smov 104  }
  0x3e   : > { %720 = vmatpush.bf16.msra.mxu0 %v1479_v16  ;;  %s1717_s5 = smov 112   ;;  %s1718_s13 = smov 40  }
  0x3f   : > { %v1934_v1 = vld [vmem:[%s1929_s26] sm:$0xff]  ;;  %s1719_s27 = smov 48   ;;  %s1720_s29 = smov 56  }
  0x40   : > { %v652_v2 = vsel %vm651_vm1, %v1934_v1, 0.0  ;;  %v1588_v4 = vpop.eup %1587  ;;  %s1721_s14 = smov 16   ;;  %s1722_s17 = smov 8  }
  0x41   : > { %653 = vadd.xlane.f32.xlu0 %v652_v2  ;;  %v656_v5 = vmul.f32 32.0, %v1588_v4  ;;  %vm660_vm2 = vweird.f32 %v1588_v4  ;;  %s1723_s28 = smov 24  }
  0x43   : > { %v657_v6 = vsub.f32 1.0, %v656_v5 }
  0x45   : > { %v658_v7 = vmul.f32 %v1588_v4, %v657_v6 }
  0x47   : > { %v659_v8 = vadd.f32 %v1588_v4, %v658_v7 }
  0x49   : > { %v1938_v9 = vsel %vm660_vm2, %v1588_v4, %v659_v8 }
  0xb4   : > { %v654_v10 = vpop.xlane.xlu0 %653 }
  0xb5   : > { %v662_v11 = vmul.f32 %v1938_v9, %v654_v10 }
  0xb7   : > { %v663_v12 = vsub.f32 %v1934_v1, %v662_v11 }
  0xb9   : > { %v664_v13 = vmul.f32 %v663_v12, %v663_v12 }
  0xbb   : > { %v665_v14 = vsel %vm651_vm1, %v664_v13, 0.0 }
  0xbc   : > { %666 = vadd.xlane.f32.xlu0 %v665_v14 }
 0x12f   : > { %v667_v17 = vpop.xlane.xlu0 %666 }
 0x130   : > { %v668_v18 = vmul.f32 %v667_v17, %v1938_v9 }
 0x132   : > { %v669_v19 = vadd.f32 1e-05, %v668_v18 }
 0x134   : > { %1589 = vrsqrt.f32 %v669_v19  ;;  %vm676_vm4 = vweird.f32 %v669_v19 }
 0x13a   : > { %v1590_v20 = vpop.eup %1589 }
 0x13b   : > { %v671_v21 = vmul.f32 %v1590_v20, %v669_v19  ;;  %vm677_vm3 = vweird.f32 %v1590_v20 }
 0x13c   : > { %vm678_vm5 = vmor %vm676_vm4, %vm677_vm3 }
 0x13d   : > { %v672_v22 = vmul.f32 %v1590_v20, %v671_v21 }
 0x13f   : > { %v673_v23 = vmul.f32 0.5, %v672_v22 }
 0x141   : > { %v674_v24 = vsub.f32 1.5, %v673_v23 }
 0x143   : > { %v675_v25 = vmul.f32 %v1590_v20, %v674_v24 }
 0x145   : > { %v679_v27 = vsel %vm678_vm5, %v1590_v20, %v675_v25 }
 0x146   : > { %v680_v28 = vmul.f32 %v679_v27, %v663_v12 }
 0x148   : > { %v684_v30 = vmul.f32 %v1579_v26, %v680_v28 }
 0x14a   : > { %v688_v31 = vadd.f32 %v1580_v29, %v684_v30 }
 0x14c   : > { %v689_v32 = vpack.c.bf16 %v688_v31, %v688_v31 }
 0x14e   : > { %1411 = vmatmul.msk.bf16.vlgmr.msra.gmra.mxu0 %vm651_vm1, %v689_v32 }
 0x1cb   : > { %v722_v34 = vpop.f32.mrf.mxu0 }
 0x1cc   : > { %v723_v35 = vadd.f32 %v1581_v33, %v722_v34 }
 0x1ce   : > { %v1962_v36 = vpack.c.bf16 %v723_v35, %v723_v35 }
 0x1d0   : > { %786 = vrot.lane.b32.xlu0 %v1962_v36, %s1710_s22  ;;  %762 = vrot.lane.b32.xlu2 %v1962_v36, %s1711_s24  ;;  %s2159_s24 = scalar_lea.vmem %s2106_s6, %s1870_s30 }
 0x1d1   : > { %728 = vrot.lane.b32.xlu1 %v1962_v36, %s1712_s16  ;;  %s2160_s16 = sld [smem:[#allocation21_spill]] }
 0x1d3   : > { %v724_v37 = vpop.f32.mrf.mxu0 }
 0x1d8   : > { %898 = vrot.lane.b32.xlu0 %v1962_v36, %s1713_s15  ;;  %s2161_s15 = scalar_lea.vmem %s2160_s16, %s1870_s30 }
 0x1e0   : > { %842 = vrot.lane.b32.xlu0 %v1962_v36, %s1714_s21 }
 0x22a   : > { %v763_v38 = vpop.permute.xlu2 %762 }
 0x22b   : > { %v769_v39 = vsel %vm767_vm6, %v763_v38, 0 }
 0x22c   : > { %778 = vmatpush.bf16.msra.mxu2 %v769_v39 }
 0x242   : > { %v787_v40 = vpop.permute.xlu0 %786 }
 0x243   : > { %v729_v41 = vpop.permute.xlu1 %728  ;;  %v792_v42 = vsel %vm730_vm7, %v787_v40, 0 }
 0x244   : > { %v735_v43 = vsel %vm730_vm7, %v729_v41, 0  ;;  %801 = vmatpush.bf16.xpose.msrb.mxu2 %v792_v42 }
 0x245   : > { %744 = vmatpush.bf16.xpose.msra.mxu1 %v735_v43 }
 0x24a   : > { %v899_v44 = vpop.permute.xlu0 %898 }
 0x24b   : > { %v904_v45 = vsel %vm730_vm7, %v899_v44, 0 }
 0x24c   : > { %1412 = vmatmul.msk.bf16.vlgmr.msra.gmra.mxu1 %vm730_vm7, %v1962_v36  ;;  %913 = vmatpush.bf16.xpose.msra.mxu3 %v904_v45 }
 0x252   : > { %v843_v46 = vpop.permute.xlu0 %842 }
 0x253   : > { %v848_v47 = vsel %vm730_vm7, %v843_v46, 0 }
 0x254   : > { %857 = vmatpush.bf16.xpose.msrb.mxu0 %v848_v47 }
 0x2c9   : > { %v746_v48 = vpop.f32.mrf.mxu1 }
 0x2ca   : > { %v750_v49 = vsel %vm730_vm7, %v746_v48, -inf }
 0x2cb   : > { %751 = vmax.xlane.f32.xlu1 %v750_v49 }
 0x2d1   : > { %v748_v50 = vpop.f32.mrf.mxu1 }
 0x33e   : > { %v752_v51 = vpop.xlane.xlu1 %751 }
 0x33f   : > { %v753_v52 = vsub.f32 %v746_v48, %v752_v51  ;;  %v1482_v51 = vld [vmem:[%s1896_s23 + $0x8] sm:$0xff] }
 0x340   : > { %999 = vmatpush.bf16.msra.mxu0 %v1482_v51 }
 0x341   : > { %v754_v53 = vmul.f32 1.442695, %v753_v52  ;;  %v1481_v52 = vld [vmem:[%s1896_s23] sm:$0xff] }
 0x343   : > { %1591 = vpow2.f32 %v754_v53 }
 0x344   : > { %1000 = vmatpush.bf16.msra.mxu0 %v1481_v52 }
 0x349   : > { %v1592_v54 = vpop.eup %1591 }
 0x34a   : > { %v756_v55 = vsel %vm730_vm7, %v1592_v54, 0.0 }
 0x34b   : > { %757 = vadd.xlane.f32.xlu2 %v756_v55 }
 0x363   : > { %784 = vrot.lane.b32.xlu2 %v1962_v36, %s1715_s20 }
 0x36b   : > { %896 = vrot.lane.b32.xlu2 %v1962_v36, %s1716_s3 }
 0x373   : > { %840 = vrot.lane.b32.xlu2 %v1962_v36, %s1717_s5  ;;  %s2162_s5 = sld [smem:[#allocation9_spill]] }
 0x3be   : > { %v758_v56 = vpop.xlane.xlu2 %757 }
 0x3bf   : > { %1593 = vrcp.f32 %v758_v56 }
 0x3c5   : > { %v1594_v57 = vpop.eup %1593 }
 0x3c6   : > { %v785_v58 = vpop.permute.xlu2 %784  ;;  %v760_v59 = vmul.f32 %v1594_v57, %v1592_v54 }
 0x3c8   : > { %v761_v60 = vpack.c.bf16 %v760_v59, %v760_v59 }
 0x3ca   : > { %1413 = vmatmul.msk.bf16.vlgmr.msra.gmra.mxu2 %vm730_vm7, %v761_v60  ;;  %v1582_v60 = vld [vmem:[%s2159_s24] ss:$0 sm:$0xff]  ;;  %s1194_s24 = sshll.u32 %s1929_s26, 4  ;;  %s1195_s24 = int_to_ptr.vmem [resolvable:$true] %s1194_s24 }
 0x3ce   : > { %v897_v61 = vpop.permute.xlu2 %896 }
 0x3cf   : > { %1418 = vmatmul.msk.bf16.vlgmr.msra.gmra.mxu3 %vm730_vm7, %v897_v61 }
 0x3d6   : > { %v841_v62 = vpop.permute.xlu2 %840 }
 0x3d7   : > { %1416 = vmatmul.msk.bf16.vlgmr.msrb.gmra.mxu0 %vm730_vm7, %v841_v62 }
 0x3da   : > { %1414 = vmatmul.msk.bf16.vlgmr.msrb.gmra.mxu2 %vm730_vm7, %v785_v58 }
 0x44d   : > { %v1985_v63 = vpop.f32.mrf.mxu2 }
 0x452   : > { %v915_v0 = vpop.f32.mrf.mxu3 }
 0x453   : > { %v919_v2 = vsel %vm730_vm7, %v915_v0, -inf }
 0x454   : > { %920 = vmax.xlane.f32.xlu0 %v919_v2  ;;  %v859_v3 = vpop.f32.mrf.mxu0 }
 0x455   : > { %v782_v4 = vpop.f32.mrf.mxu2  ;;  %v863_v5 = vsel %vm730_vm7, %v859_v3, -inf }
 0x456   : > { %864 = vmax.xlane.f32.xlu2 %v863_v5 }
 0x45a   : > { %v917_v6 = vpop.f32.mrf.mxu3 }
 0x45c   : > { %v861_v7 = vpop.f32.mrf.mxu0 }
 0x45d   : > { %v803_v8 = vpop.f32.mrf.mxu2 }
 0x45e   : > { %v807_v10 = vsel %vm730_vm7, %v803_v8, -inf }
 0x45f   : > { %808 = vmax.xlane.f32.xlu1 %v807_v10  ;;  %v1483_v10 = vld [vmem:[%s1913_s18] sm:$0xff] }
 0x465   : > { %v805_v11 = vpop.f32.mrf.mxu2 }
 0x46e   : > { %931 = vrot.lane.b32.xlu2 %v1962_v36, %s1718_s13 }
 0x4c7   : > { %v921_v22 = vpop.xlane.xlu0 %920 }
 0x4c8   : > { %v922_v23 = vsub.f32 %v915_v0, %v921_v22 }
 0x4c9   : > { %v865_v12 = vpop.xlane.xlu2 %864 }
 0x4ca   : > { %v866_v13 = vsub.f32 %v859_v3, %v865_v12  ;;  %v923_v24 = vmul.f32 1.442695, %v922_v23 }
 0x4cc   : > { %v867_v14 = vmul.f32 1.442695, %v866_v13 }
 0x4ce   : > { %1595 = vpow2.f32 %v867_v14 }
 0x4d1   : > { %v932_v35 = vpop.permute.xlu2 %931 }
 0x4d2   : > { %v809_v15 = vpop.xlane.xlu1 %808  ;;  %v937_v39 = vsel %vm767_vm6, %v932_v35, 0 }
 0x4d3   : > { %v810_v16 = vsub.f32 %v803_v8, %v809_v15  ;;  %v1484_v8 = vld [vmem:[%s1913_s18 + $0x8] sm:$0xff] }
 0x4d4   : > { %v1596_v17 = vpop.eup %1595 }
 0x4d5   : > { %v811_v18 = vmul.f32 1.442695, %v810_v16  ;;  %v869_v19 = vsel %vm730_vm7, %v1596_v17, 0.0 }
 0x4d6   : > { %870 = vadd.xlane.f32.xlu0 %v869_v19  ;;  %v1583_v19 = vld [vmem:[%s2161_s15] ss:$0 sm:$0xff] }
 0x4d7   : > { %1597 = vpow2.f32 %v811_v18 }
 0x4d8   : > { %1599 = vpow2.f32 %v923_v24 }
 0x4dd   : > { %v1598_v20 = vpop.eup %1597 }
 0x4de   : > { %v813_v21 = vsel %vm730_vm7, %v1598_v20, 0.0  ;;  %v1600_v25 = vpop.eup %1599 }
 0x4df   : > { %814 = vadd.xlane.f32.xlu1 %v813_v21  ;;  %v925_v26 = vsel %vm730_vm7, %v1600_v25, 0.0  ;;  %v1584_v21 = vld [vmem:[%s623_s0] ss:$0 sm:$0xff] }
 0x4ea   : > { %875 = vrot.lane.b32.xlu0 %v1962_v36, %s1719_s27 }
 0x4f8   : > { %819 = vrot.lane.b32.xlu1 %v1962_v36, %s1720_s29 }
 0x522   : > { %926 = vadd.xlane.f32.xlu1 %v925_v26  ;;  %v1491_v26 = vld [vmem:[%s1927_s7 + $0x30] sm:$0xff] }
 0x549   : > { %v871_v27 = vpop.xlane.xlu0 %870 }
 0x54a   : > { %1601 = vrcp.f32 %v871_v27  ;;  %v1490_v27 = vld [vmem:[%s1927_s7 + $0x28] sm:$0xff] }
 0x550   : > { %v1602_v28 = vpop.eup %1601 }
 0x551   : > { %v873_v29 = vmul.f32 %v1602_v28, %v1596_v17  ;;  %v1489_v28 = vld [vmem:[%s1927_s7 + $0x20] sm:$0xff] }
 0x552   : > { %v815_v31 = vpop.xlane.xlu1 %814 }
 0x553   : > { %v874_v33 = vpack.c.bf16 %v873_v29, %v873_v29  ;;  %1603 = vrcp.f32 %v815_v31  ;;  %v1488_v29 = vld [vmem:[%s1927_s7 + $0x18] sm:$0xff]  ;;  %v1486_v31 = vld [vmem:[%s1927_s7 + $0x8] sm:$0xff] }
 0x559   : > { %v1604_v34 = vpop.eup %1603 }
 0x55a   : > { %v817_v36 = vmul.f32 %v1604_v34, %v1598_v20  ;;  %v1485_v34 = vld [vmem:[%s1927_s7] sm:$0xff] }
 0x55c   : > { %v876_v30 = vpop.permute.xlu0 %875  ;;  %v818_v40 = vpack.c.bf16 %v817_v36, %v817_v36 }
 0x55d   : > { %v881_v32 = vsel %vm767_vm6, %v876_v30, 0  ;;  %v1487_v30 = vld [vmem:[%s1927_s7 + $0x10] sm:$0xff] }
 0x55e   : > { %890 = vmatpush.bf16.msrb.mxu1 %v881_v32  ;;  %v1585_v32 = vld [vmem:[%s631_s11] ss:$0 sm:$0xff]  ;;  %s1472_s11 = sshll.u32 %s2162_s5, 3 }
 0x561   : > { %1417 = vmatmul.msk.bf16.vlgmr.msrb.gmra.mxu1 %vm730_vm7, %v874_v33 }
 0x562   : > { %1069 = vmatpush.bf16.msra.mxu1 %v1484_v8 }
 0x566   : > { %1070 = vmatpush.bf16.msra.mxu1 %v1483_v10 }
 0x56a   : > { %v820_v37 = vpop.permute.xlu1 %819 }
 0x56b   : > { %v825_v38 = vsel %vm767_vm6, %v820_v37, 0 }
 0x56c   : > { %834 = vmatpush.bf16.msra.mxu2 %v825_v38 }
 0x56f   : > { %1415 = vmatmul.msk.bf16.vlgmr.msra.gmra.mxu2 %vm730_vm7, %v818_v40 }
 0x570   : > { %946 = vmatpush.bf16.msrb.mxu2 %v937_v39 }
 0x595   : > { %v927_v41 = vpop.xlane.xlu1 %926 }
 0x596   : > { %1605 = vrcp.f32 %v927_v41 }
 0x59c   : > { %v1606_v42 = vpop.eup %1605 }
 0x59d   : > { %v929_v43 = vmul.f32 %v1606_v42, %v1600_v25  ;;  %v1492_v25 = vld [vmem:[%s1927_s7 + $0x38] sm:$0xff]  ;;  %s2163_s7 = sld [smem:[#allocation6_spill]] }
 0x59e   : > { %1166 = vmatpush.bf16.msrb.mxu3 %v1492_v25 }
 0x59f   : > { %v930_v44 = vpack.c.bf16 %v929_v43, %v929_v43 }
 0x5a1   : > { %1419 = vmatmul.msk.bf16.vlgmr.msrb.gmra.mxu2 %vm730_vm7, %v930_v44 }
 0x5a2   : > { %1167 = vmatpush.bf16.msrb.mxu3 %v1491_v26 }
 0x5a3   : > { %s2167_s18 = sand.u32 1, %s2163_s7  }
 0x5a4   : > { %s1182_s16 = scalar_lea.sflag [#allocation3], %s2167_s18 }
 0x5a6   : > { %1168 = vmatpush.bf16.msrb.mxu3 %v1490_v27 }
 0x5aa   : > { %1169 = vmatpush.bf16.msrb.mxu3 %v1489_v28 }
 0x5ae   : > { %1170 = vmatpush.bf16.msrb.mxu3 %v1488_v29 }
 0x5b2   : > { %1171 = vmatpush.bf16.msrb.mxu3 %v1487_v30 }
 0x5b6   : > { %1172 = vmatpush.bf16.msrb.mxu3 %v1486_v31 }
 0x5ba   : > { %1173 = vmatpush.bf16.msrb.mxu3 %v1485_v34 }
 0x5de   : > { %v892_v45 = vpop.f32.mrf.mxu1 }
 0x5df   : > { %957 = vrot.lane.b32.xlu0 %v892_v45, %s1721_s14 }
 0x5e6   : > { %v894_v46 = vpop.f32.mrf.mxu1 }
 0x5f2   : > { %v836_v47 = vpop.f32.mrf.mxu2 }
 0x5f3   : > { %953 = vrot.lane.b32.xlu2 %v836_v47, %s1722_s17 }
 0x5fa   : > { %v838_v48 = vpop.f32.mrf.mxu2 }
 0x624   : > { %v948_v49 = vpop.f32.mrf.mxu2 }
 0x625   : > { %961 = vrot.lane.b32.xlu2 %v948_v49, %s1723_s28  ;;  %s2165_s28 = sld [smem:[#allocation23_spill]] }
 0x62b   : > { %s2166_s19 = smov %s2165_s28  ;;  %s1192_s22 = scalar_lea.hbm %s2165_s28, %s1472_s11 }
 0x62c   : > { %v950_v50 = vpop.f32.mrf.mxu2  ;;  %s1196_s23 = sshll.u32 %s1192_s22, 4  ;;  %s1633_s20 = scalar_lea.hbm %s2166_s19, 16  ;;  %s1197_s23 = int_to_ptr.hbm [resolvable:$true] %s1196_s23 }
 0x62d   : > { %s1627_s15 = sshra.s32 %s1197_s23, 4  ;;  %s1628_s15 = int_to_ptr.hbm [resolvable:$true] %s1627_s15 }
 0x62e   : > { %s1629_s30 = scalar_lea.hbm %s1628_s15, 8  ;;  %p1634_p5 = scmp.lt.s32.totalorder %s1628_s15, %s2166_s19 }
 0x62f   : > { %p1630_p1 = scmp.ne.s32.totalorder %s1628_s15, %s1629_s30  ;;  %p1635_p6 = scmp.lt.s32.totalorder %s1633_s20, %s1629_s30 }
 0x631   : > { %p1631_p2 = pnand %p1630_p1, %p1843_p3  ;;  %p1636_p7 = por %p1635_p6, %p1634_p5 }
 0x633   : > { %p1632_p4 = pneg %p1631_p2 }
 0x635   : > { %p1637_p8 = pnand %p1636_p7, %p1632_p4 }
 0x64d   : > { %v954_v53 = vpop.permute.xlu2 %953 }
 0x64e   : > { %v964_v55 = vsel %vm730_vm7, %v1985_v63, %v954_v53  ;;  %v1586_v53 = vld [vmem:[%s639_s25] ss:$0 sm:$0xff] }
 0x651   : > { %v958_v54 = vpop.permute.xlu0 %957 }
 0x652   : > { %v966_v56 = vsel %vm965_vm8, %v964_v55, %v958_v54 }
 0x67f   : > { %v962_v57 = vpop.permute.xlu2 %961 }
 0x680   : > { %v968_v58 = vsel %vm967_vm9, %v966_v56, %v962_v57 }
 0x681   : > { %v969_v59 = vpack.c.bf16 %v968_v58, %v968_v58 }
 0x683   : > { %1428 = vmatmul.msk.bf16.vlgmr.msra.gmra.mxu0 %vm651_vm1, %v969_v59 }
 0x700   : > { %v1002_v61 = vpop.f32.mrf.mxu0 }
 0x701   : > { %v1003_v62 = vadd.f32 %v1582_v60, %v1002_v61 }
 0x703   : > { %v2013_v0 = vadd.f32 %v1003_v62, %v1934_v1 }
 0x705   : > { %v1009_v63 = vsel %vm651_vm1, %v2013_v0, 0.0 }
 0x706   : > { %1010 = vadd.xlane.f32.xlu0 %v1009_v63 }
 0x708   : > { %v1004_v2 = vpop.f32.mrf.mxu0 }
 0x779   : > { %v1011_v3 = vpop.xlane.xlu0 %1010 }
 0x77a   : > { %v1012_v4 = vmul.f32 %v1011_v3, %v1938_v9 }
 0x77c   : > { %v1013_v5 = vsub.f32 %v2013_v0, %v1012_v4 }
 0x77e   : > { %v1014_v6 = vmul.f32 %v1013_v5, %v1013_v5 }
 0x780   : > { %v1015_v7 = vsel %vm651_vm1, %v1014_v6, 0.0 }
 0x781   : > { %1016 = vadd.xlane.f32.xlu1 %v1015_v7 }
 0x7f4   : > { %v1017_v1 = vpop.xlane.xlu1 %1016 }
 0x7f5   : > { %v1018_v11 = vmul.f32 %v1017_v1, %v1938_v9 }
 0x7f7   : > { %v1019_v12 = vadd.f32 1e-05, %v1018_v11 }
 0x7f9   : > { %1607 = vrsqrt.f32 %v1019_v12  ;;  %vm1026_vm11 = vweird.f32 %v1019_v12 }
 0x7ff   : > { %v1608_v13 = vpop.eup %1607 }
 0x800   : > { %v1021_v14 = vmul.f32 %v1608_v13, %v1019_v12  ;;  %vm1027_vm10 = vweird.f32 %v1608_v13 }
 0x801   : > { %vm1028_vm12 = vmor %vm1026_vm11, %vm1027_vm10 }
 0x802   : > { %v1022_v15 = vmul.f32 %v1608_v13, %v1021_v14 }
 0x804   : > { %v1023_v16 = vmul.f32 0.5, %v1022_v15 }
 0x806   : > { %v1024_v17 = vsub.f32 1.5, %v1023_v16 }
 0x808   : > { %v1025_v18 = vmul.f32 %v1608_v13, %v1024_v17 }
 0x80a   : > { %v1029_v9 = vsel %vm1028_vm12, %v1608_v13, %v1025_v18 }
 0x80b   : > { %v1030_v20 = vmul.f32 %v1029_v9, %v1013_v5 }
 0x80d   : > { %v1034_v22 = vmul.f32 %v1583_v19, %v1030_v20 }
 0x80f   : > { %v1038_v23 = vadd.f32 %v1584_v21, %v1034_v22 }
 0x811   : > { %v1039_v24 = vpack.c.bf16 %v1038_v23, %v1038_v23 }
 0x813   : > { %1437 = vmatmul.msk.bf16.vlgmr.msra.gmra.mxu1 %vm651_vm1, %v1039_v24 }
 0x890   : > { %v1072_v33 = vpop.f32.mrf.mxu1 }
 0x891   : > { %v1073_v35 = vadd.f32 %v1585_v32, %v1072_v33 }
 0x893   : > { %v1438_v36 = vmul.f32 -1.702, %v1073_v35 }
 0x895   : > { %v1078_v37 = vmul.f32 1.442695, %v1438_v36 }
 0x897   : > { %1609 = vpow2.f32 %v1078_v37 }
 0x898   : > { %v1074_v38 = vpop.f32.mrf.mxu1 }
 0x89d   : > { %v1610_v39 = vpop.eup %1609 }
 0x89e   : > { %v1080_v40 = vadd.f32 1.0, %v1610_v39 }
 0x8a0   : > { %1611 = vrcp.f32 %v1080_v40  ;;  %v1092_v44 = vand.u32 2147483648, %v1080_v40  ;;  %v1090_v46 = vand.u32 2147483647, %v1080_v40  ;;  %vm1086_vm14 = vweird.f32 %v1080_v40 }
 0x8a2   : > { %v1093_v48 = vor.u32 1.1754944e-38, %v1092_v44  ;;  %vm1091_vm0 = vcmp.eq.f32.partialorder %v1090_v46, 8.507059e+37 }
 0x8a6   : > { %v1612_v41 = vpop.eup %1611 }
 0x8a7   : > { %v1082_v42 = vmul.f32 %v1612_v41, %v1080_v40  ;;  %vm1087_vm13 = vweird.f32 %v1612_v41 }
 0x8a8   : > { %vm1088_vm15 = vmor %vm1086_vm14, %vm1087_vm13 }
 0x8a9   : > { %v1083_v43 = vsub.f32 1.0, %v1082_v42 }
 0x8ab   : > { %v1084_v45 = vmul.f32 %v1612_v41, %v1083_v43 }
 0x8ad   : > { %v1085_v47 = vadd.f32 %v1612_v41, %v1084_v45 }
 0x8af   : > { %v1089_v49 = vsel %vm1088_vm15, %v1612_v41, %v1085_v47 }
 0x8b0   : > { %v1094_v50 = vsel %vm1091_vm0, %v1093_v48, %v1089_v49 }
 0x8b1   : > { %v1096_v51 = vmul.f32 %v1094_v50, %v1073_v35 }
 0x8b3   : > { %v1097_v52 = vpack.c.bf16 %v1096_v51, %v1096_v51 }
 0x8b5   : > { %1174 = vmatmul.bf16.vlgmr.msrb.gmra.mxu3 %v1097_v52 }
 0x938   : > { %v1175_v54 = vpop.f32.mrf.mxu3 }
 0x939   : > { %v1176_v55 = vadd.f32 %v1586_v53, %v1175_v54 }
 0x93b   : > { %v1179_v56 = vadd.f32 %v1176_v55, %v2013_v0 }
 0x93d   : > { %1180 = vst.msk [vmem:[%s1929_s26] sm:$0xff] %vm651_vm1, %v1179_v56 }
 0x93e   : > { %1640 = shalt.err (!%p1637_p8)
}
 0x93f   : > { %1493 = dma.vmem_to_hbm [thread:$0]  (%p1843_p3), %s1195_s24, 128, %s1197_s23, %s1182_s16  }
 0x940   : > { %v1177_v57 = vpop.f32.mrf.mxu3 }
 0x941 PF: > { %s2168_s26 = sld [smem:[#allocation12_spill]] }
 0x942   : > { %s2169_s5 = sld [smem:[#allocation5_spill]] }
 0x947   : > { %p1499_p10 = scmp.ge.s32.totalorder %s2168_s26, 2 }
 0x948   : > { %s1208_s11 = sand.u32 1, %s2169_s5  }
 0x949   : > { %p1496_p11 = pnand %p1499_p10, %p1853_p9  ;;  %s1209_s13 = scalar_lea.sflag [#allocation3], %s1208_s11 }
 0x94b   : > { %p1497_p12 = pneg %p1496_p11 }
 0x94d   : > { %1674 = dma.done.wait (%p1497_p12), %s1209_s13, 128  }
 0x94e   : > { %1676 = vsyncadd (%p1497_p12), %s1209_s13, 4294967168  ;;  %s26_s15 = sadd.s32 1, %s2168_s26   ;;  %s2171_s25 = sld [smem:[#allocation6_spill]] }
 0x94f   : > { %p23_p13 = scmp.ge.s32.totalorder %s26_s15, 6   ;;  %s2172_s26 = sld [smem:[#allocation7_spill]] }
 0x950   : > { %s2173_s27 = sld [smem:[#allocation17_spill]] }
 0x951   : > { %s2174_s28 = sld [smem:[#allocation10_spill]]  ;;  %25 = sbr.rel (!%p23_p13) target bundleno = 12 (0xc), region = 147 }
 0x952   : > { %s2175_s29 = sld [smem:[#allocation11_spill]] }
 0x953   : > { %s2176_s30 = sld [smem:[#allocation13_spill]] }
 0x954   : > { %s2177_s14 = sld [smem:[#allocation15_spill]] }
 0x956   :  { %1215 = vsyncpa [#allocation3], 1 }
 0x957   :  { %1217 = vsyncpa [#allocation3 + $0x1], 1 }

</bundles_post_ra>
